<compile_context>
chip_gen: v6e
topology: v6e:2x2x1
jax: 0.10.0
libtpu: 0.0.40
codegen_flags: <defaults>
</compile_context>

<pallas_src>
import functools

import jax
import jax.numpy as jnp
from jax import lax
from jax.experimental import pallas as pl
from jax.experimental.pallas import tpu as pltpu

THETA0 = 3   # kernel size of the boundary-extraction pool
THETA = 5    # kernel size of the boundary-extension pool
EPS = 1e-7


def _recip(x):
    """Reciprocal on the EUP (vrcp) + two Newton steps: ~1e-9 relative error."""
    r = pl.reciprocal(x, approx=True)
    r = r * (2.0 - x * r)
    r = r * (2.0 - x * r)
    return r


def _sep_pool(x, radius, row_shifts, col_shifts, op):
    """Separable (2r+1)^2 stride-1 'same' min/max pool on a lane-dense (rows, H*W) map.

    row_shifts[d] / col_shifts[d] hold (static roll amount, pre-broadcast validity mask)
    for a shift of d image rows / columns in the flat layout.  Invalid (out-of-image or
    cross-row) taps are replaced by the center value, which is neutral for both max and
    min pooling, hence exactly equivalent to torch's -inf / +inf implicit padding.
    """
    out = x
    for d in range(-radius, radius + 1):
        if d == 0:
            continue
        amt, mask = row_shifts[d]
        out = op(out, jnp.where(mask, pltpu.roll(x, amt, axis=1), x))
    y = out
    out = y
    for d in range(-radius, radius + 1):
        if d == 0:
            continue
        amt, mask = col_shifts[d]
        out = op(out, jnp.where(mask, pltpu.roll(y, amt, axis=1), y))
    return out


def _boundary_loss_kernel(pred_ref, gt_ref, rc_ref, out_ref, stack_ref, *, NB, C, H, W):
    L = H * W
    R1 = NB * C          # rows per stacked map ([one-hot] or [softmax])
    Rp = 2 * R1          # rows of the pooled stack [one-hot ; softmax]

    # ---- per-sample channel softmax + one-hot, staged into the (Rp, L) stack ------
    ch = lax.broadcasted_iota(jnp.int32, (C, 1), 0)
    for i in range(NB):
        logits = pred_ref[i]                                   # (C, L) f32
        labels = gt_ref[i]                                     # (1, L) i32
        m = jnp.max(logits, axis=0, keepdims=True)
        e = jnp.exp(logits - m)
        sm = e * _recip(jnp.sum(e, axis=0, keepdims=True))
        oh = (ch == jnp.clip(labels, 0, C - 1)).astype(jnp.float32)
        stack_ref[i * C:(i + 1) * C, :] = oh
        stack_ref[R1 + i * C:R1 + (i + 1) * C, :] = sm
    x0 = stack_ref[...]                                        # (Rp, L)

    # ---- shift amounts + boundary masks, hoisted & pre-broadcast once -------------
    rc = rc_ref[...]                                           # (2, L) i32 [row; col]
    r_idx = jnp.broadcast_to(rc[0:1, :], (Rp, L))
    c_idx = jnp.broadcast_to(rc[1:2, :], (Rp, L))
    p0 = (THETA0 - 1) // 2
    p1 = (THETA - 1) // 2
    row_shifts, col_shifts = {}, {}
    for d in range(-max(p0, p1), max(p0, p1) + 1):
        if d == 0:
            continue
        # roll(x, s)[i] == x[(i - s) % L]; we want x[i + d*W] (rows) / x[i + d] (cols).
        row_shifts[d] = ((-d * W) % L, (r_idx >= -d) & (r_idx < H - d))
        col_shifts[d] = ((-d) % L, (c_idx >= -d) & (c_idx < W - d))

    # ---- boundary maps (min-pool identity removes the 1-x buffers) ----------------
    b = x0 - _sep_pool(x0, p0, row_shifts, col_shifts, jnp.minimum)   # [gt_b ; pr_b]
    ext = _sep_pool(b, p1, row_shifts, col_shifts, jnp.maximum)       # [gt_ext ; pr_ext]
    gt_b, pr_b = b[:R1, :], b[R1:, :]
    gt_ext, pr_ext = ext[:R1, :], ext[R1:, :]

    # ---- lane reductions on the (idle) MXU -> lane-dense (1, R1) results ----------
    ones_row = jnp.ones((1, L), jnp.float32)

    def lane_sums(v):   # sum over H*W per row, transposed into lanes
        return lax.dot_general(ones_row, v, (((1,), (1,)), ((), ())),
                               preferred_element_type=jnp.float32)

    sum_pb = lane_sums(pr_b)
    sum_gb = lane_sums(gt_b)
    num_p = lane_sums(pr_b * gt_ext)
    num_r = lane_sums(pr_ext * gt_b)

    P = num_p * _recip(sum_pb + EPS)
    R = num_r * _recip(sum_gb + EPS)
    BF1 = (2.0 * P * R) * _recip(P + R + EPS)
    out_ref[0] = 1.0 - BF1                       # (1, NB*C) lane-dense per-(n,c) loss


def _samples_per_step(N, C, L):
    """Largest divisor of N with a pred block <= ~2 MiB; capped to keep the per-sample
    softmax unroll (and compile time) small.  NB*C >= 8 whenever achievable."""
    budget = 2 * 1024 * 1024
    cap = 16
    nb = 1
    for d in range(1, min(N, cap) + 1):
        if N % d == 0 and d * C * L * 4 <= budget:
            nb = d
    return nb


def boundary_loss(pred, gt):
    """pred: (N, C, H, W) float logits; gt: (N, H, W) integer labels."""
    N, C, H, W = pred.shape
    L = H * W

    # Lane-dense views: the last dim (H*W) maps to the 128-wide lane axis.
    pred_f = pred.astype(jnp.float32).reshape(N, C, L)
    gt_i = gt.reshape(N, 1, L).astype(jnp.int32)

    # Pixel row / column index maps, computed once in plain XLA (avoids in-kernel
    # vector integer div/mod) and reused by every grid step.
    pix = jnp.arange(L, dtype=jnp.int32)
    rcmap = jnp.stack([pix // W, pix % W]).astype(jnp.int32)   # (2, L)

    NB = _samples_per_step(N, C, L)
    grid_n = N // NB
    R1 = NB * C

    # Generation-aware VMEM budget derived from the actual per-step working set.
    try:
        phys_vmem = int(pltpu.get_tpu_info().vmem_capacity_bytes)
    except Exception:
        phys_vmem = 64 * 1024 * 1024   # v7x floor
    live = 26 * 2 * R1 * L * 4                                  # stacked maps/masks/pools
    io = 2 * 2 * (R1 * L * 4 + NB * L * 4 + 2 * L * 4)          # double-buffered blocks
    vmem_limit = int(max(16 << 20, min(phys_vmem // 2, live + io + (8 << 20))))

    per_nc = pl.pallas_call(
        functools.partial(_boundary_loss_kernel, NB=NB, C=C, H=H, W=W),
        out_shape=jax.ShapeDtypeStruct((grid_n, 1, R1), jnp.float32),
        grid_spec=pltpu.PrefetchScalarGridSpec(
            num_scalar_prefetch=0,
            grid=(grid_n,),
            in_specs=[
                pl.BlockSpec((NB, C, L), lambda n: (n, 0, 0)),
                pl.BlockSpec((NB, 1, L), lambda n: (n, 0, 0)),
                pl.BlockSpec((2, L), lambda n: (0, 0)),        # constant rc map
            ],
            out_specs=pl.BlockSpec((1, 1, R1), lambda n: (n, 0, 0)),
            scratch_shapes=[pltpu.VMEM((2 * R1, L), jnp.float32)],
        ),
        compiler_params=pltpu.CompilerParams(
            dimension_semantics=("parallel",),
            vmem_limit_bytes=vmem_limit,
        ),
    )(pred_f, gt_i, rcmap)

    # mean over (N, C) of (1 - BF1)
    return jnp.sum(per_nc) / (N * C)


def boundary_loss_ref(pred, gt):
    """Pure-JAX reference mirroring the PyTorch forward, for correctness check."""
    N, C, H, W = pred.shape
    sm = jax.nn.softmax(pred.astype(jnp.float32), axis=1)
    gtc = jnp.clip(gt.astype(jnp.int32), 0, C - 1)
    one_hot = jax.nn.one_hot(gtc, C, dtype=jnp.float32).transpose(0, 3, 1, 2)

    def mp(x, k):
        p = (k - 1) // 2
        return lax.reduce_window(
            x, -jnp.inf, lax.max,
            window_dimensions=(1, 1, k, k),
            window_strides=(1, 1, 1, 1),
            padding=[(0, 0), (0, 0), (p, p), (p, p)])

    gt_inv = 1.0 - one_hot
    pr_inv = 1.0 - sm
    gt_b = mp(gt_inv, THETA0) - gt_inv
    pr_b = mp(pr_inv, THETA0) - pr_inv
    gt_b_ext = mp(gt_b, THETA)
    pr_b_ext = mp(pr_b, THETA)

    P = jnp.sum(pr_b * gt_b_ext, axis=(2, 3)) / (jnp.sum(pr_b, axis=(2, 3)) + EPS)
    R = jnp.sum(pr_b_ext * gt_b, axis=(2, 3)) / (jnp.sum(gt_b, axis=(2, 3)) + EPS)
    BF1 = 2 * P * R / (P + R + EPS)
    return jnp.mean(1.0 - BF1)


if __name__ == "__main__":
    key = jax.random.PRNGKey(0)
    k_pred, k_gt = jax.random.split(key)

    N, C, H, W = 2, 4, 16, 16
    pred = jax.random.normal(k_pred, (N, C, H, W), dtype=jnp.float32)
    gt = jax.random.randint(k_gt, (N, H, W), 0, C, dtype=jnp.int32)

    loss = jax.block_until_ready(boundary_loss(pred, gt))
    ref = jax.block_until_ready(boundary_loss_ref(pred, gt))
    assert jnp.allclose(loss, ref, rtol=1e-4, atol=1e-5), (loss, ref)

    print("KERNEL_OK")
</pallas_src>

<mosaic_0001>
module attributes {stable_mosaic.version = 11 : i64} {
  func.func @_boundary_loss_kernel(%arg0: i32, %arg1: memref<2x4x256xf32, #tpu.memory_space<vmem>>, %arg2: memref<2x1x256xi32, #tpu.memory_space<vmem>>, %arg3: memref<2x256xi32, #tpu.memory_space<vmem>>, %arg4: memref<1x1x8xf32, #tpu.memory_space<vmem>>, %arg5: memref<16x256xf32, #tpu.memory_space<vmem>>) attributes {dimension_semantics = [#tpu.dimension_semantics<parallel>], iteration_bounds = array<i64: 1>, scalar_prefetch = 0 : i64, scratch_operands = 1 : i64, tpu.core_type = #tpu.core_type<tc>, window_params = [{transform_indices = @transform_0, window_bounds = array<i64: 2, 4, 256>}, {transform_indices = @transform_1, window_bounds = array<i64: 2, 1, 256>}, {pipeline_mode = #tpu.pipeline_mode<synchronous>, transform_indices = @transform_2, window_bounds = array<i64: 2, 256>}, {transform_indices = @transform_3, window_bounds = array<i64: 1, 1, 8>}]} {
    %0 = tpu.iota {dimensions = array<i32: 0>} : vector<4x1xi32>
    %c0 = arith.constant 0 : index
    %c0_0 = arith.constant 0 : index
    %c0_1 = arith.constant 0 : index
    %1 = vector.load %arg1[%c0, %c0_0, %c0_1] : memref<2x4x256xf32, #tpu.memory_space<vmem>>, vector<1x4x256xf32>
    %2 = vector.shape_cast %1 : vector<1x4x256xf32> to vector<4x256xf32>
    %c0_2 = arith.constant 0 : index
    %c0_3 = arith.constant 0 : index
    %c0_4 = arith.constant 0 : index
    %3 = vector.load %arg2[%c0_2, %c0_3, %c0_4] : memref<2x1x256xi32, #tpu.memory_space<vmem>>, vector<1x1x256xi32>
    %4 = vector.shape_cast %3 : vector<1x1x256xi32> to vector<1x256xi32>
    %cst = arith.constant dense<0xFF800000> : vector<256xf32>
    %5 = vector.multi_reduction <maximumf>, %2, %cst [0] : vector<4x256xf32> to vector<256xf32>
    %6 = vector.shape_cast %5 : vector<256xf32> to vector<1x256xf32>
    %7 = vector.broadcast %6 : vector<1x256xf32> to vector<4x256xf32>
    %8 = arith.subf %2, %7 : vector<4x256xf32>
    %9 = math.exp %8 : vector<4x256xf32>
    %cst_5 = arith.constant dense<0.000000e+00> : vector<256xf32>
    %10 = vector.multi_reduction <add>, %9, %cst_5 [0] : vector<4x256xf32> to vector<256xf32>
    %11 = vector.shape_cast %10 : vector<256xf32> to vector<1x256xf32>
    %12 = tpu.reciprocal %11 {approx = true} : vector<1x256xf32> -> vector<1x256xf32>
    %13 = arith.mulf %11, %12 : vector<1x256xf32>
    %cst_6 = arith.constant 2.000000e+00 : f32
    %14 = vector.broadcast %cst_6 : f32 to vector<1x256xf32>
    %15 = arith.subf %14, %13 : vector<1x256xf32>
    %16 = arith.mulf %12, %15 : vector<1x256xf32>
    %17 = arith.mulf %11, %16 : vector<1x256xf32>
    %cst_7 = arith.constant 2.000000e+00 : f32
    %18 = vector.broadcast %cst_7 : f32 to vector<1x256xf32>
    %19 = arith.subf %18, %17 : vector<1x256xf32>
    %20 = arith.mulf %16, %19 : vector<1x256xf32>
    %21 = vector.broadcast %20 : vector<1x256xf32> to vector<4x256xf32>
    %22 = arith.mulf %9, %21 : vector<4x256xf32>
    %c0_i32 = arith.constant 0 : i32
    %c3_i32 = arith.constant 3 : i32
    %23 = vector.broadcast %c0_i32 : i32 to vector<1x256xi32>
    %24 = arith.maxsi %23, %4 : vector<1x256xi32>
    %25 = vector.broadcast %c3_i32 : i32 to vector<1x256xi32>
    %26 = arith.minsi %25, %24 : vector<1x256xi32>
    %27 = vector.broadcast %0 : vector<4x1xi32> to vector<4x256xi32>
    %28 = vector.broadcast %26 : vector<1x256xi32> to vector<4x256xi32>
    %29 = arith.cmpi eq, %27, %28 : vector<4x256xi32>
    %30 = arith.extui %29 : vector<4x256xi1> to vector<4x256xi32>
    %31 = arith.sitofp %30 : vector<4x256xi32> to vector<4x256xf32>
    %c0_8 = arith.constant 0 : index
    %c0_9 = arith.constant 0 : index
    %32 = vector.load %arg5[%c0_8, %c0_9] : memref<16x256xf32, #tpu.memory_space<vmem>>, vector<4x256xf32>
    tpu.vector_store %arg5[%c0_8, %c0_9], %31 {strides = array<i32>} : memref<16x256xf32, #tpu.memory_space<vmem>>, vector<4x256xf32>,
    %c8 = arith.constant 8 : index
    %c0_10 = arith.constant 0 : index
    %33 = vector.load %arg5[%c8, %c0_10] : memref<16x256xf32, #tpu.memory_space<vmem>>, vector<4x256xf32>
    tpu.vector_store %arg5[%c8, %c0_10], %22 {strides = array<i32>} : memref<16x256xf32, #tpu.memory_space<vmem>>, vector<4x256xf32>,
    %c1 = arith.constant 1 : index
    %c0_11 = arith.constant 0 : index
    %c0_12 = arith.constant 0 : index
    %34 = vector.load %arg1[%c1, %c0_11, %c0_12] : memref<2x4x256xf32, #tpu.memory_space<vmem>>, vector<1x4x256xf32>
    %35 = vector.shape_cast %34 : vector<1x4x256xf32> to vector<4x256xf32>
    %c1_13 = arith.constant 1 : index
    %c0_14 = arith.constant 0 : index
    %c0_15 = arith.constant 0 : index
    %36 = vector.load %arg2[%c1_13, %c0_14, %c0_15] : memref<2x1x256xi32, #tpu.memory_space<vmem>>, vector<1x1x256xi32>
    %37 = vector.shape_cast %36 : vector<1x1x256xi32> to vector<1x256xi32>
    %cst_16 = arith.constant dense<0xFF800000> : vector<256xf32>
    %38 = vector.multi_reduction <maximumf>, %35, %cst_16 [0] : vector<4x256xf32> to vector<256xf32>
    %39 = vector.shape_cast %38 : vector<256xf32> to vector<1x256xf32>
    %40 = vector.broadcast %39 : vector<1x256xf32> to vector<4x256xf32>
    %41 = arith.subf %35, %40 : vector<4x256xf32>
    %42 = math.exp %41 : vector<4x256xf32>
    %cst_17 = arith.constant dense<0.000000e+00> : vector<256xf32>
    %43 = vector.multi_reduction <add>, %42, %cst_17 [0] : vector<4x256xf32> to vector<256xf32>
    %44 = vector.shape_cast %43 : vector<256xf32> to vector<1x256xf32>
    %45 = tpu.reciprocal %44 {approx = true} : vector<1x256xf32> -> vector<1x256xf32>
    %46 = arith.mulf %44, %45 : vector<1x256xf32>
    %cst_18 = arith.constant 2.000000e+00 : f32
    %47 = vector.broadcast %cst_18 : f32 to vector<1x256xf32>
    %48 = arith.subf %47, %46 : vector<1x256xf32>
    %49 = arith.mulf %45, %48 : vector<1x256xf32>
    %50 = arith.mulf %44, %49 : vector<1x256xf32>
    %cst_19 = arith.constant 2.000000e+00 : f32
    %51 = vector.broadcast %cst_19 : f32 to vector<1x256xf32>
    %52 = arith.subf %51, %50 : vector<1x256xf32>
    %53 = arith.mulf %49, %52 : vector<1x256xf32>
    %54 = vector.broadcast %53 : vector<1x256xf32> to vector<4x256xf32>
    %55 = arith.mulf %42, %54 : vector<4x256xf32>
    %c0_i32_20 = arith.constant 0 : i32
    %c3_i32_21 = arith.constant 3 : i32
    %56 = vector.broadcast %c0_i32_20 : i32 to vector<1x256xi32>
    %57 = arith.maxsi %56, %37 : vector<1x256xi32>
    %58 = vector.broadcast %c3_i32_21 : i32 to vector<1x256xi32>
    %59 = arith.minsi %58, %57 : vector<1x256xi32>
    %60 = vector.broadcast %0 : vector<4x1xi32> to vector<4x256xi32>
    %61 = vector.broadcast %59 : vector<1x256xi32> to vector<4x256xi32>
    %62 = arith.cmpi eq, %60, %61 : vector<4x256xi32>
    %63 = arith.extui %62 : vector<4x256xi1> to vector<4x256xi32>
    %64 = arith.sitofp %63 : vector<4x256xi32> to vector<4x256xf32>
    %c4 = arith.constant 4 : index
    %c0_22 = arith.constant 0 : index
    %65 = vector.load %arg5[%c4, %c0_22] : memref<16x256xf32, #tpu.memory_space<vmem>>, vector<4x256xf32>
    tpu.vector_store %arg5[%c4, %c0_22], %64 {strides = array<i32>} : memref<16x256xf32, #tpu.memory_space<vmem>>, vector<4x256xf32>,
    %c12 = arith.constant 12 : index
    %c0_23 = arith.constant 0 : index
    %66 = vector.load %arg5[%c12, %c0_23] : memref<16x256xf32, #tpu.memory_space<vmem>>, vector<4x256xf32>
    tpu.vector_store %arg5[%c12, %c0_23], %55 {strides = array<i32>} : memref<16x256xf32, #tpu.memory_space<vmem>>, vector<4x256xf32>,
    %c0_24 = arith.constant 0 : index
    %c0_25 = arith.constant 0 : index
    %67 = vector.load %arg5[%c0_24, %c0_25] : memref<16x256xf32, #tpu.memory_space<vmem>>, vector<16x256xf32>
    %c0_26 = arith.constant 0 : index
    %c0_27 = arith.constant 0 : index
    %68 = vector.load %arg3[%c0_26, %c0_27] : memref<2x256xi32, #tpu.memory_space<vmem>>, vector<2x256xi32>
    %69 = vector.extract_strided_slice %68 {offsets = [0, 0], sizes = [1, 256], strides = [1, 1]} : vector<2x256xi32> to vector<1x256xi32>
    %70 = vector.shape_cast %69 : vector<1x256xi32> to vector<1x256xi32>
    %71 = vector.broadcast %70 : vector<1x256xi32> to vector<16x256xi32>
    %72 = vector.extract_strided_slice %68 {offsets = [1, 0], sizes = [1, 256], strides = [1, 1]} : vector<2x256xi32> to vector<1x256xi32>
    %73 = vector.shape_cast %72 : vector<1x256xi32> to vector<1x256xi32>
    %74 = vector.broadcast %73 : vector<1x256xi32> to vector<16x256xi32>
    %c2_i32 = arith.constant 2 : i32
    %75 = vector.broadcast %c2_i32 : i32 to vector<16x256xi32>
    %76 = arith.cmpi sge, %71, %75 : vector<16x256xi32>
    %c18_i32 = arith.constant 18 : i32
    %77 = vector.broadcast %c18_i32 : i32 to vector<16x256xi32>
    %78 = arith.cmpi slt, %71, %77 : vector<16x256xi32>
    %79 = arith.andi %76, %78 : vector<16x256xi1>
    %c2_i32_28 = arith.constant 2 : i32
    %80 = vector.broadcast %c2_i32_28 : i32 to vector<16x256xi32>
    %81 = arith.cmpi sge, %74, %80 : vector<16x256xi32>
    %c18_i32_29 = arith.constant 18 : i32
    %82 = vector.broadcast %c18_i32_29 : i32 to vector<16x256xi32>
    %83 = arith.cmpi slt, %74, %82 : vector<16x256xi32>
    %84 = arith.andi %81, %83 : vector<16x256xi1>
    %c1_i32 = arith.constant 1 : i32
    %85 = vector.broadcast %c1_i32 : i32 to vector<16x256xi32>
    %86 = arith.cmpi sge, %71, %85 : vector<16x256xi32>
    %c17_i32 = arith.constant 17 : i32
    %87 = vector.broadcast %c17_i32 : i32 to vector<16x256xi32>
    %88 = arith.cmpi slt, %71, %87 : vector<16x256xi32>
    %89 = arith.andi %86, %88 : vector<16x256xi1>
    %c1_i32_30 = arith.constant 1 : i32
    %90 = vector.broadcast %c1_i32_30 : i32 to vector<16x256xi32>
    %91 = arith.cmpi sge, %74, %90 : vector<16x256xi32>
    %c17_i32_31 = arith.constant 17 : i32
    %92 = vector.broadcast %c17_i32_31 : i32 to vector<16x256xi32>
    %93 = arith.cmpi slt, %74, %92 : vector<16x256xi32>
    %94 = arith.andi %91, %93 : vector<16x256xi1>
    %c-1_i32 = arith.constant -1 : i32
    %95 = vector.broadcast %c-1_i32 : i32 to vector<16x256xi32>
    %96 = arith.cmpi sge, %71, %95 : vector<16x256xi32>
    %c15_i32 = arith.constant 15 : i32
    %97 = vector.broadcast %c15_i32 : i32 to vector<16x256xi32>
    %98 = arith.cmpi slt, %71, %97 : vector<16x256xi32>
    %99 = arith.andi %96, %98 : vector<16x256xi1>
    %c-1_i32_32 = arith.constant -1 : i32
    %100 = vector.broadcast %c-1_i32_32 : i32 to vector<16x256xi32>
    %101 = arith.cmpi sge, %74, %100 : vector<16x256xi32>
    %c15_i32_33 = arith.constant 15 : i32
    %102 = vector.broadcast %c15_i32_33 : i32 to vector<16x256xi32>
    %103 = arith.cmpi slt, %74, %102 : vector<16x256xi32>
    %104 = arith.andi %101, %103 : vector<16x256xi1>
    %c-2_i32 = arith.constant -2 : i32
    %105 = vector.broadcast %c-2_i32 : i32 to vector<16x256xi32>
    %106 = arith.cmpi sge, %71, %105 : vector<16x256xi32>
    %c14_i32 = arith.constant 14 : i32
    %107 = vector.broadcast %c14_i32 : i32 to vector<16x256xi32>
    %108 = arith.cmpi slt, %71, %107 : vector<16x256xi32>
    %109 = arith.andi %106, %108 : vector<16x256xi1>
    %c-2_i32_34 = arith.constant -2 : i32
    %110 = vector.broadcast %c-2_i32_34 : i32 to vector<16x256xi32>
    %111 = arith.cmpi sge, %74, %110 : vector<16x256xi32>
    %c14_i32_35 = arith.constant 14 : i32
    %112 = vector.broadcast %c14_i32_35 : i32 to vector<16x256xi32>
    %113 = arith.cmpi slt, %74, %112 : vector<16x256xi32>
    %114 = arith.andi %111, %113 : vector<16x256xi1>
    %c16_i32 = arith.constant 16 : i32
    %115 = tpu.dynamic_rotate %67 by %c16_i32 dim 1 : vector<16x256xf32>, i32 -> vector<16x256xf32>
    %116 = arith.select %89, %115, %67 : vector<16x256xi1>, vector<16x256xf32>
    %117 = arith.minimumf %67, %116 : vector<16x256xf32>
    %c240_i32 = arith.constant 240 : i32
    %118 = tpu.dynamic_rotate %67 by %c240_i32 dim 1 : vector<16x256xf32>, i32 -> vector<16x256xf32>
    %119 = arith.select %99, %118, %67 : vector<16x256xi1>, vector<16x256xf32>
    %120 = arith.minimumf %117, %119 : vector<16x256xf32>
    %c1_i32_36 = arith.constant 1 : i32
    %121 = tpu.dynamic_rotate %120 by %c1_i32_36 dim 1 : vector<16x256xf32>, i32 -> vector<16x256xf32>
    %122 = arith.select %94, %121, %120 : vector<16x256xi1>, vector<16x256xf32>
    %123 = arith.minimumf %120, %122 : vector<16x256xf32>
    %c255_i32 = arith.constant 255 : i32
    %124 = tpu.dynamic_rotate %120 by %c255_i32 dim 1 : vector<16x256xf32>, i32 -> vector<16x256xf32>
    %125 = arith.select %104, %124, %120 : vector<16x256xi1>, vector<16x256xf32>
    %126 = arith.minimumf %123, %125 : vector<16x256xf32>
    %127 = arith.subf %67, %126 : vector<16x256xf32>
    %c32_i32 = arith.constant 32 : i32
    %128 = tpu.dynamic_rotate %127 by %c32_i32 dim 1 : vector<16x256xf32>, i32 -> vector<16x256xf32>
    %129 = arith.select %79, %128, %127 : vector<16x256xi1>, vector<16x256xf32>
    %130 = arith.maximumf %127, %129 : vector<16x256xf32>
    %c16_i32_37 = arith.constant 16 : i32
    %131 = tpu.dynamic_rotate %127 by %c16_i32_37 dim 1 : vector<16x256xf32>, i32 -> vector<16x256xf32>
    %132 = arith.select %89, %131, %127 : vector<16x256xi1>, vector<16x256xf32>
    %133 = arith.maximumf %130, %132 : vector<16x256xf32>
    %c240_i32_38 = arith.constant 240 : i32
    %134 = tpu.dynamic_rotate %127 by %c240_i32_38 dim 1 : vector<16x256xf32>, i32 -> vector<16x256xf32>
    %135 = arith.select %99, %134, %127 : vector<16x256xi1>, vector<16x256xf32>
    %136 = arith.maximumf %133, %135 : vector<16x256xf32>
    %c224_i32 = arith.constant 224 : i32
    %137 = tpu.dynamic_rotate %127 by %c224_i32 dim 1 : vector<16x256xf32>, i32 -> vector<16x256xf32>
    %138 = arith.select %109, %137, %127 : vector<16x256xi1>, vector<16x256xf32>
    %139 = arith.maximumf %136, %138 : vector<16x256xf32>
    %c2_i32_39 = arith.constant 2 : i32
    %140 = tpu.dynamic_rotate %139 by %c2_i32_39 dim 1 : vector<16x256xf32>, i32 -> vector<16x256xf32>
    %141 = arith.select %84, %140, %139 : vector<16x256xi1>, vector<16x256xf32>
    %142 = arith.maximumf %139, %141 : vector<16x256xf32>
    %c1_i32_40 = arith.constant 1 : i32
    %143 = tpu.dynamic_rotate %139 by %c1_i32_40 dim 1 : vector<16x256xf32>, i32 -> vector<16x256xf32>
    %144 = arith.select %94, %143, %139 : vector<16x256xi1>, vector<16x256xf32>
    %145 = arith.maximumf %142, %144 : vector<16x256xf32>
    %c255_i32_41 = arith.constant 255 : i32
    %146 = tpu.dynamic_rotate %139 by %c255_i32_41 dim 1 : vector<16x256xf32>, i32 -> vector<16x256xf32>
    %147 = arith.select %104, %146, %139 : vector<16x256xi1>, vector<16x256xf32>
    %148 = arith.maximumf %145, %147 : vector<16x256xf32>
    %c254_i32 = arith.constant 254 : i32
    %149 = tpu.dynamic_rotate %139 by %c254_i32 dim 1 : vector<16x256xf32>, i32 -> vector<16x256xf32>
    %150 = arith.select %114, %149, %139 : vector<16x256xi1>, vector<16x256xf32>
    %151 = arith.maximumf %148, %150 : vector<16x256xf32>
    %152 = vector.extract_strided_slice %127 {offsets = [0, 0], sizes = [8, 256], strides = [1, 1]} : vector<16x256xf32> to vector<8x256xf32>
    %153 = vector.extract_strided_slice %127 {offsets = [8, 0], sizes = [8, 256], strides = [1, 1]} : vector<16x256xf32> to vector<8x256xf32>
    %154 = vector.extract_strided_slice %151 {offsets = [0, 0], sizes = [8, 256], strides = [1, 1]} : vector<16x256xf32> to vector<8x256xf32>
    %155 = vector.extract_strided_slice %151 {offsets = [8, 0], sizes = [8, 256], strides = [1, 1]} : vector<16x256xf32> to vector<8x256xf32>
    %cst_42 = arith.constant 1.000000e+00 : f32
    %156 = vector.broadcast %cst_42 : f32 to vector<1x256xf32>
    %cst_43 = arith.constant dense<0.000000e+00> : vector<1x8xf32>
    %157 = tpu.matmul %156, %153, %cst_43 {dimension_numbers = #tpu.dot_dimension_numbers<[1], [1], [0], [0], [0, 0, 1, 0], [], []>} : vector<1x256xf32>, vector<8x256xf32>, vector<1x8xf32> -> vector<1x8xf32>
    %cst_44 = arith.constant dense<0.000000e+00> : vector<1x8xf32>
    %158 = tpu.matmul %156, %152, %cst_44 {dimension_numbers = #tpu.dot_dimension_numbers<[1], [1], [0], [0], [0, 0, 1, 0], [], []>} : vector<1x256xf32>, vector<8x256xf32>, vector<1x8xf32> -> vector<1x8xf32>
    %159 = arith.mulf %153, %154 : vector<8x256xf32>
    %cst_45 = arith.constant dense<0.000000e+00> : vector<1x8xf32>
    %160 = tpu.matmul %156, %159, %cst_45 {dimension_numbers = #tpu.dot_dimension_numbers<[1], [1], [0], [0], [0, 0, 1, 0], [], []>} : vector<1x256xf32>, vector<8x256xf32>, vector<1x8xf32> -> vector<1x8xf32>
    %161 = arith.mulf %155, %152 : vector<8x256xf32>
    %cst_46 = arith.constant dense<0.000000e+00> : vector<1x8xf32>
    %162 = tpu.matmul %156, %161, %cst_46 {dimension_numbers = #tpu.dot_dimension_numbers<[1], [1], [0], [0], [0, 0, 1, 0], [], []>} : vector<1x256xf32>, vector<8x256xf32>, vector<1x8xf32> -> vector<1x8xf32>
    %cst_47 = arith.constant 1.000000e-07 : f32
    %163 = vector.broadcast %cst_47 : f32 to vector<1x8xf32>
    %164 = arith.addf %157, %163 : vector<1x8xf32>
    %165 = tpu.reciprocal %164 {approx = true} : vector<1x8xf32> -> vector<1x8xf32>
    %166 = arith.mulf %164, %165 : vector<1x8xf32>
    %cst_48 = arith.constant 2.000000e+00 : f32
    %167 = vector.broadcast %cst_48 : f32 to vector<1x8xf32>
    %168 = arith.subf %167, %166 : vector<1x8xf32>
    %169 = arith.mulf %165, %168 : vector<1x8xf32>
    %170 = arith.mulf %164, %169 : vector<1x8xf32>
    %cst_49 = arith.constant 2.000000e+00 : f32
    %171 = vector.broadcast %cst_49 : f32 to vector<1x8xf32>
    %172 = arith.subf %171, %170 : vector<1x8xf32>
    %173 = arith.mulf %169, %172 : vector<1x8xf32>
    %174 = arith.mulf %160, %173 : vector<1x8xf32>
    %cst_50 = arith.constant 1.000000e-07 : f32
    %175 = vector.broadcast %cst_50 : f32 to vector<1x8xf32>
    %176 = arith.addf %158, %175 : vector<1x8xf32>
    %177 = tpu.reciprocal %176 {approx = true} : vector<1x8xf32> -> vector<1x8xf32>
    %178 = arith.mulf %176, %177 : vector<1x8xf32>
    %cst_51 = arith.constant 2.000000e+00 : f32
    %179 = vector.broadcast %cst_51 : f32 to vector<1x8xf32>
    %180 = arith.subf %179, %178 : vector<1x8xf32>
    %181 = arith.mulf %177, %180 : vector<1x8xf32>
    %182 = arith.mulf %176, %181 : vector<1x8xf32>
    %cst_52 = arith.constant 2.000000e+00 : f32
    %183 = vector.broadcast %cst_52 : f32 to vector<1x8xf32>
    %184 = arith.subf %183, %182 : vector<1x8xf32>
    %185 = arith.mulf %181, %184 : vector<1x8xf32>
    %186 = arith.mulf %162, %185 : vector<1x8xf32>
    %cst_53 = arith.constant 2.000000e+00 : f32
    %187 = vector.broadcast %cst_53 : f32 to vector<1x8xf32>
    %188 = arith.mulf %187, %174 : vector<1x8xf32>
    %189 = arith.mulf %188, %186 : vector<1x8xf32>
    %190 = arith.addf %174, %186 : vector<1x8xf32>
    %cst_54 = arith.constant 1.000000e-07 : f32
    %191 = vector.broadcast %cst_54 : f32 to vector<1x8xf32>
    %192 = arith.addf %190, %191 : vector<1x8xf32>
    %193 = tpu.reciprocal %192 {approx = true} : vector<1x8xf32> -> vector<1x8xf32>
    %194 = arith.mulf %192, %193 : vector<1x8xf32>
    %cst_55 = arith.constant 2.000000e+00 : f32
    %195 = vector.broadcast %cst_55 : f32 to vector<1x8xf32>
    %196 = arith.subf %195, %194 : vector<1x8xf32>
    %197 = arith.mulf %193, %196 : vector<1x8xf32>
    %198 = arith.mulf %192, %197 : vector<1x8xf32>
    %cst_56 = arith.constant 2.000000e+00 : f32
    %199 = vector.broadcast %cst_56 : f32 to vector<1x8xf32>
    %200 = arith.subf %199, %198 : vector<1x8xf32>
    %201 = arith.mulf %197, %200 : vector<1x8xf32>
    %202 = arith.mulf %189, %201 : vector<1x8xf32>
    %cst_57 = arith.constant 1.000000e+00 : f32
    %203 = vector.broadcast %cst_57 : f32 to vector<1x8xf32>
    %204 = arith.subf %203, %202 : vector<1x8xf32>
    %c0_58 = arith.constant 0 : index
    %c0_59 = arith.constant 0 : index
    %c0_60 = arith.constant 0 : index
    %205 = vector.load %arg4[%c0_58, %c0_59, %c0_60] : memref<1x1x8xf32, #tpu.memory_space<vmem>>, vector<1x1x8xf32>
    %206 = vector.shape_cast %205 : vector<1x1x8xf32> to vector<1x8xf32>
    %207 = vector.shape_cast %204 : vector<1x8xf32> to vector<1x1x8xf32>
    tpu.vector_store %arg4[%c0_58, %c0_59, %c0_60], %207 {strides = array<i32>} : memref<1x1x8xf32, #tpu.memory_space<vmem>>, vector<1x1x8xf32>,
    return
  }
  func.func @transform_0(%arg0: i32) -> (i32, i32, i32) {
    %c0_i32 = arith.constant 0 : i32
    %c0_i32_0 = arith.constant 0 : i32
    %c0_i32_1 = arith.constant 0 : i32
    return %arg0, %c0_i32, %c0_i32_0 : i32, i32, i32
  }
  func.func @transform_1(%arg0: i32) -> (i32, i32, i32) {
    %c0_i32 = arith.constant 0 : i32
    %c0_i32_0 = arith.constant 0 : i32
    %c0_i32_1 = arith.constant 0 : i32
    return %arg0, %c0_i32, %c0_i32_0 : i32, i32, i32
  }
  func.func @transform_2(%arg0: i32) -> (i32, i32) {
    %c0_i32 = arith.constant 0 : i32
    %c0_i32_0 = arith.constant 0 : i32
    %c0_i32_1 = arith.constant 0 : i32
    return %c0_i32, %c0_i32_0 : i32, i32
  }
  func.func @transform_3(%arg0: i32) -> (i32, i32, i32) {
    %c0_i32 = arith.constant 0 : i32
    %c0_i32_0 = arith.constant 0 : i32
    %c0_i32_1 = arith.constant 0 : i32
    return %arg0, %c0_i32, %c0_i32_0 : i32, i32, i32
  }
}

</mosaic_0001>

<bundles_post_ra>
// kernel: tpu_custom_call.1
= control target key start
LH: loop header
LB: loop body
LE: loop exit
PB: predicated region body
PF: predicated region fallthrough
CT: control target
= control target key end

     0   :  { %8 = vsyncpa [#allocation4], 0  ;;  %s1644_s0 = inlined_call_operand.hbm [shape: f32[2,4,256], index: 0, kind: input, shape index: {}]   ;;  %s1645_s1 = inlined_call_operand.hbm [shape: s32[2,1,256], index: 1, kind: input, shape index: {}]   ;;  %s1646_s2 = inlined_call_operand.hbm [shape: s32[2,256], index: 2, kind: input, shape index: {}]   ;;  %s1647_s3 = inlined_call_operand.hbm [shape: f32[1,1,8], index: 3, kind: output, shape index: {}]  }
   0x1   :  { %9 = vsyncpa [#allocation7], 0 }
   0x2   :  { %10 = vsyncpa [#allocation5], 0  ;;  %s1035_s12 = smov [#allocation6]  }
   0x3   :  { %s28_s13 = sshll.u32 %s1035_s12, 4  ;;  %s29_s13 = int_to_ptr.vmem [resolvable:$true] %s28_s13 }
   0x4   :  { %s957_s14 = scalar_lea.vmem %s29_s13, 64  ;;  %p962_p1 = scmp.lt.s32.totalorder %s29_s13, %s29_s13 }
   0x5   :  { %p958_p0 = scmp.ne.s32.totalorder %s29_s13, %s957_s14  ;;  %p963_p2 = scmp.lt.s32.totalorder %s957_s14, %s957_s14 }
   0x7   :  { %p964_p3 = por %p963_p2, %p962_p1 }
   0x9   :  { %p965_p4 = pnand %p964_p3, %p958_p0 }
   0xb   :  { %968 = shalt.err (!%p965_p4)
}
   0xc   :  { %s1036_s15 = smov 32   ;;  %s1037_s16 = smov 2  }
   0xd   :  { %34 = dma.hbm_to_vmem [thread:$0]  %s1645_s1, 64, %s29_s13, [#allocation7], %s1036_s15, %s1036_s15, %s1037_s16  }
   0xe   :  { %s1038_s19 = smov [#allocation3]  }
   0xf   :  { %s16_s20 = sshll.u32 %s1038_s19, 4  ;;  %s17_s20 = int_to_ptr.vmem [resolvable:$true] %s16_s20 }
  0x10   :  { %s977_s21 = scalar_lea.vmem %s17_s20, 256  ;;  %p982_p6 = scmp.lt.s32.totalorder %s17_s20, %s17_s20 }
  0x11   :  { %p978_p5 = scmp.ne.s32.totalorder %s17_s20, %s977_s21  ;;  %p983_p7 = scmp.lt.s32.totalorder %s977_s21, %s977_s21 }
  0x13   :  { %p984_p8 = por %p983_p7, %p982_p6 }
  0x15   :  { %p985_p9 = pnand %p984_p8, %p978_p5 }
  0x17   :  { %988 = shalt.err (!%p985_p9)
}
  0x18   :  { %s1039_s22 = smov 128   ;;  %s1040_s23 = smov 8  }
  0x19   :  { %22 = dma.hbm_to_vmem [thread:$0]  %s1644_s0, 256, %s17_s20, [#allocation4], %s1039_s22, %s1039_s22, %s1040_s23  }
  0x1a   :  { %s1041_s26 = smov [#allocation8]  }
  0x1b   :  { %s41_s27 = sshll.u32 %s1041_s26, 4  ;;  %s42_s27 = int_to_ptr.vmem [resolvable:$true] %s41_s27 }
  0x1c   :  { %s997_s1 = scalar_lea.vmem %s42_s27, 64  ;;  %p1002_p11 = scmp.lt.s32.totalorder %s42_s27, %s42_s27 }
  0x1d   :  { %p998_p10 = scmp.ne.s32.totalorder %s42_s27, %s997_s1  ;;  %p1003_p12 = scmp.lt.s32.totalorder %s997_s1, %s997_s1 }
  0x1f   :  { %p1004_p13 = por %p1003_p12, %p1002_p11 }
  0x21   :  { %p1005_p0 = pnand %p1004_p13, %p998_p10 }
  0x23   :  { %1008 = shalt.err (!%p1005_p0)
}
  0x24   :  { %44 = dma.hbm_to_vmem [thread:$0]  %s1646_s2, 64, %s42_s27, [#allocation7]  }
  0x25   :  { %1029 = dma.done.wait [#allocation4], 256  }
  0x26   :  { %1030 = vsyncadd [#allocation4], 4294967040 }
  0x27   :  { %1031 = dma.done.wait [#allocation7], 128  }
  0x28   :  { %1032 = vsyncadd [#allocation7], 4294967168  ;;  %v54_v0 = vlaneseq  ;;  %vm61_vm0 = vcmask 1043456   ;;  %v57_v3 = vld [vmem:[#allocation6] sm:$0x3]  ;;  %v1092_v6 = vld [vmem:[#allocation3] sm:$0xff] }
  0x29   :  { %v147_v4 = vld [vmem:[#allocation6 + $0x2] sm:$0x3]  ;;  %vm119_vm1 = vcmp.gt.s32.totalorder %v57_v3, 0  ;;  %v59_v7 = vcombine.high %v1092_v6, %v1092_v6  ;;  %v62_v8 = vsel %vm61_vm0, %v1092_v6, -inf  ;;  %v1098_v9 = vld [vmem:[#allocation3 + $0x8] sm:$0xff]  ;;  %v1042_v28 = vmov 0.0  }
  0x2a   :  { %v1084_v1 = vshrl.u32 %v54_v0, 7  ;;  %vm208_vm2 = vcmp.gt.s32.totalorder %v147_v4, 0  ;;  %v120_v10 = vsel %vm119_vm1, %v57_v3, 0  ;;  %v63_v12 = vrot.slane %v62_v8, 4  ;;  %s1043_s0 = smov 16   ;;  %s1044_s2 = smov 112  }
  0x2b   :  { %v209_v11 = vsel %vm208_vm2, %v147_v4, 0  ;;  %v149_v13 = vcombine.high %v1098_v9, %v1098_v9  ;;  %vm121_vm3 = vcmp.lt.s32.totalorder %v120_v10, 3  ;;  %v69_v14 = vsel %vm61_vm0, %v59_v7, -inf  ;;  %s1045_s30 = smov 1   ;;  %s1046_s4 = smov 127  }
  0x2c   :  { %v1087_v2 = vsub.s32 0, %v1084_v1  ;;  %v1090_v5 = vsub.s32 1, %v1084_v1  ;;  %vm210_vm4 = vcmp.lt.s32.totalorder %v209_v11, 3  ;;  %v151_v15 = vsel %vm61_vm0, %v1098_v9, -inf  ;;  %s1047_s5 = smov 96   ;;  %s1048_s6 = smov 126  }
  0x2d   :  { %v122_v16 = vsel %vm121_vm3, %v120_v10, 3  ;;  %v211_v17 = vsel %vm210_vm4, %v209_v11, 3  ;;  %v64_v18 = vmax.f32 %v62_v8, %v63_v12  ;;  %v70_v19 = vrot.slane %v69_v14, 4  ;;  %s1050_s7 = smov [#allocation9]  }
  0x2e   :  { %v126_v20 = vrot.slane %v122_v16, %v1087_v2  ;;  %v215_v21 = vrot.slane %v211_v17, %v1087_v2  ;;  %v130_v22 = vrot.slane %v122_v16, %v1090_v5  ;;  %v219_v23 = vrot.slane %v211_v17, %v1090_v5  ;;  %s899_s8 = sshll.u32 %s1050_s7, 4  ;;  %s900_s8 = int_to_ptr.vmem [resolvable:$true] %s899_s8 }
  0x2f   :  { %v65_v24 = vrot.slane %v64_v18, 2  ;;  %v71_v25 = vmax.f32 %v69_v14, %v70_v19  ;;  %v152_v26 = vrot.slane %v151_v15, 4  ;;  %v158_v27 = vsel %vm61_vm0, %v149_v13, -inf  ;;  %s1009_s9 = scalar_lea.vmem %s900_s8, 16  ;;  %s1013_s10 = scalar_lea.vmem %s900_s8, 32 }
  0x30   :  { %vm131_vm5 = vcmp.eq.s32.totalorder %v1084_v1, %v126_v20  ;;  %vm220_vm6 = vcmp.eq.s32.totalorder %v1084_v1, %v215_v21  ;;  %vm132_vm7 = vcmp.eq.s32.totalorder %v1084_v1, %v130_v22  ;;  %vm221_vm8 = vcmp.eq.s32.totalorder %v1084_v1, %v219_v23  ;;  %p1010_p1 = scmp.ne.s32.totalorder %s900_s8, %s1009_s9  ;;  %p1014_p2 = scmp.lt.s32.totalorder %s900_s8, %s900_s8 }
  0x31   :  { %v909_v29 = vsel %vm131_vm5, 1.0, %v1042_v28  ;;  %v911_v30 = vsel %vm220_vm6, 1.0, %v1042_v28  ;;  %v910_v31 = vsel %vm132_vm7, 1.0, %v1042_v28  ;;  %v912_v32 = vsel %vm221_vm8, 1.0, %v1042_v28  ;;  %p1015_p3 = scmp.lt.s32.totalorder %s1013_s10, %s1009_s9 }
  0x32   :  { %137 = vst [vmem:[#allocation2 + $0x10] sm:$0xf] %v909_v29  ;;  %v228_v33 = vrot.slane %v911_v30, 4  ;;  %138 = vst [vmem:[#allocation2] sm:$0xf] %v910_v31  ;;  %v229_v34 = vrot.slane %v912_v32, 4  ;;  %v66_v35 = vmax.f32 %v64_v18, %v65_v24  ;;  %v153_v37 = vmax.f32 %v151_v15, %v152_v26 }
  0x33   :  { %v72_v36 = vrot.slane %v71_v25, 2  ;;  %v159_v38 = vrot.slane %v158_v27, 4  ;;  %p1016_p4 = por %p1015_p3, %p1014_p2 }
  0x34   :  { %232 = vst [vmem:[#allocation2 + $0x10] sm:$0xf0] %v228_v33  ;;  %233 = vst [vmem:[#allocation2] sm:$0xf0] %v229_v34  ;;  %v67_v39 = vrot.slane %v66_v35, 1  ;;  %v154_v41 = vrot.slane %v153_v37, 2 }
  0x35   :  { %v73_v40 = vmax.f32 %v71_v25, %v72_v36  ;;  %v160_v42 = vmax.f32 %v158_v27, %v159_v38  ;;  %p1017_p5 = pnand %p1016_p4, %p1010_p1 }
  0x36   :  { %v68_v43 = vmax.f32 %v66_v35, %v67_v39  ;;  %v155_v45 = vmax.f32 %v153_v37, %v154_v41 }
  0x37   :  { %v74_v44 = vrot.slane %v73_v40, 1  ;;  %v161_v46 = vrot.slane %v160_v42, 2 }
  0x38   :  { %v156_v48 = vrot.slane %v155_v45, 1 }
  0x39   :  { %v75_v47 = vmax.f32 %v73_v40, %v74_v44  ;;  %v162_v49 = vmax.f32 %v160_v42, %v161_v46 }
  0x3a   :  { %v157_v53 = vmax.f32 %v155_v45, %v156_v48 }
  0x3b   :  { %v78_v50 = vcombine.low %v68_v43, %v75_v47  ;;  %v1114_v51 = vld [vmem:[#allocation2 + $0x10] sm:$0xff]  ;;  %v1116_v52 = vld [vmem:[#allocation2] sm:$0xff]  ;;  %v163_v54 = vrot.slane %v162_v49, 1 }
  0x3c   :  { %324 = vrot.lane.b32.xlu0 %v1114_v51, %s1043_s0  ;;  %328 = vrot.lane.b32.xlu1 %v1116_v52, %s1043_s0 }
  0x3d   :  { %v80_v55 = vsub.f32 %v1092_v6, %v78_v50  ;;  %v164_v56 = vmax.f32 %v162_v49, %v163_v54 }
  0x3f   :  { %v81_v57 = vmul.f32 1.442695, %v80_v55  ;;  %v167_v58 = vcombine.low %v157_v53, %v164_v56 }
  0x40   :  { %347 = vrot.lane.b32.xlu0 %v1114_v51, %s1044_s2 }
  0x41   :  { %931 = vpow2.f32 %v81_v57  ;;  %v169_v59 = vsub.f32 %v1098_v9, %v167_v58 }
  0x43   :  { %v170_v60 = vmul.f32 1.442695, %v169_v59 }
  0x45   :  { %933 = vpow2.f32 %v170_v60 }
  0x4e   :  { %v1126_v61 = vpop.eup %931 }
  0x4f   :  { %v84_v62 = vcombine.high %v1126_v61, %v1126_v61  ;;  %v86_v63 = vsel %vm61_vm0, %v1126_v61, 0.0 }
  0x50   :  { %v87_v3 = vrot.slane %v86_v63, 4 }
  0x51   :  { %v93_v4 = vsel %vm61_vm0, %v84_v62, 0.0 }
  0x52   :  { %v88_v6 = vadd.f32 %v87_v3, %v86_v63  ;;  %v94_v7 = vrot.slane %v93_v4, 4  ;;  %v1133_v8 = vpop.eup %933 }
  0x53   :  { %v173_v9 = vcombine.high %v1133_v8, %v1133_v8  ;;  %v175_v12 = vsel %vm61_vm0, %v1133_v8, 0.0 }
  0x54   :  { %v89_v10 = vrot.slane %v88_v6, 2  ;;  %v95_v11 = vadd.f32 %v94_v7, %v93_v4  ;;  %v176_v13 = vrot.slane %v175_v12, 4 }
  0x55   :  { %v182_v16 = vsel %vm61_vm0, %v173_v9, 0.0 }
  0x56   :  { %v90_v14 = vadd.f32 %v89_v10, %v88_v6  ;;  %v96_v15 = vrot.slane %v95_v11, 2  ;;  %v177_v17 = vadd.f32 %v176_v13, %v175_v12  ;;  %v183_v18 = vrot.slane %v182_v16, 4 }
  0x58   :  { %v91_v19 = vrot.slane %v90_v14, 1  ;;  %v97_v20 = vadd.f32 %v96_v15, %v95_v11  ;;  %v178_v21 = vrot.slane %v177_v17, 2  ;;  %v184_v22 = vadd.f32 %v183_v18, %v182_v16 }
  0x5a   :  { %v92_v23 = vadd.f32 %v91_v19, %v90_v14  ;;  %v98_v24 = vrot.slane %v97_v20, 1  ;;  %v179_v25 = vadd.f32 %v178_v21, %v177_v17  ;;  %v185_v26 = vrot.slane %v184_v22, 2 }
  0x5b   :  { %v1166_v17 = vand.u32 127, %v54_v0 }
  0x5c   :  { %v99_v27 = vadd.f32 %v98_v24, %v97_v20  ;;  %935 = vrcp.f32 %v92_v23  ;;  %v180_v28 = vrot.slane %v179_v25, 1  ;;  %v186_v29 = vadd.f32 %v185_v26, %v184_v22 }
  0x5d   :  { %vm334_vm11 = vcmp.lt.s32.totalorder %v1166_v17, 16  ;;  %vm1650_vm4 = vcmp.lt.s32.totalorder %v1166_v17, 112 }
  0x5e   :  { %937 = vrcp.f32 %v99_v27  ;;  %v181_v30 = vadd.f32 %v180_v28, %v179_v25  ;;  %v187_v31 = vrot.slane %v186_v29, 1 }
  0x60   :  { %v188_v32 = vadd.f32 %v187_v31, %v186_v29  ;;  %939 = vrcp.f32 %v181_v30 }
  0x62   :  { %941 = vrcp.f32 %v188_v32 }
  0x69   :  { %v936_v33 = vpop.eup %935 }
  0x6a   :  { %v102_v34 = vmul.f32 %v936_v33, %v92_v23 }
  0x6b   :  { %v938_v35 = vpop.eup %937 }
  0x6c   :  { %v103_v36 = vmul.f32 %v938_v35, %v99_v27  ;;  %v104_v37 = vsub.f32 2.0, %v102_v34 }
  0x6d   :  { %v940_v38 = vpop.eup %939 }
  0x6e   :  { %v105_v39 = vsub.f32 2.0, %v103_v36  ;;  %v106_v40 = vmul.f32 %v936_v33, %v104_v37  ;;  %v191_v41 = vmul.f32 %v940_v38, %v181_v30 }
  0x6f   :  { %v942_v42 = vpop.eup %941 }
  0x70   :  { %v107_v43 = vmul.f32 %v938_v35, %v105_v39  ;;  %v108_v44 = vmul.f32 %v106_v40, %v92_v23  ;;  %v192_v45 = vmul.f32 %v942_v42, %v188_v32  ;;  %v193_v46 = vsub.f32 2.0, %v191_v41 }
  0x72   :  { %v109_v47 = vmul.f32 %v107_v43, %v99_v27  ;;  %v110_v48 = vsub.f32 2.0, %v108_v44  ;;  %v194_v49 = vsub.f32 2.0, %v192_v45  ;;  %v195_v50 = vmul.f32 %v940_v38, %v193_v46 }
  0x74   :  { %v111_v53 = vsub.f32 2.0, %v109_v47  ;;  %v112_v54 = vmul.f32 %v110_v48, %v106_v40  ;;  %v196_v55 = vmul.f32 %v942_v42, %v194_v49  ;;  %v197_v56 = vmul.f32 %v195_v50, %v181_v30 }
  0x76   :  { %v113_v57 = vmul.f32 %v111_v53, %v107_v43  ;;  %v198_v58 = vmul.f32 %v196_v55, %v188_v32  ;;  %v199_v59 = vsub.f32 2.0, %v197_v56 }
  0x78   :  { %v116_v60 = vcombine.low %v112_v54, %v113_v57  ;;  %v200_v62 = vsub.f32 2.0, %v198_v58  ;;  %v201_v63 = vmul.f32 %v199_v59, %v195_v50  ;;  %v266_v54 = vsub.s32 3, %v1084_v1 }
  0x7a   :  { %v118_v3 = vmul.f32 %v1126_v61, %v116_v60  ;;  %v202_v4 = vmul.f32 %v200_v62, %v196_v55  ;;  %v1156_v61 = vld [vmem:[#allocation8] sm:$0xf] }
  0x7b   :  { %v247_v14 = vrot.slane %v1156_v61, %v1087_v2  ;;  %v263_v55 = vrot.slane %v1156_v61, %v1090_v5  ;;  %v267_v56 = vrot.slane %v1156_v61, %v266_v54 }
  0x7c   :  { %142 = vst [vmem:[#allocation2 + $0x18] sm:$0xf] %v118_v3  ;;  %v140_v6 = vcombine.high %v118_v3, %v118_v3  ;;  %v205_v7 = vcombine.low %v201_v63, %v202_v4 }
  0x7d   :  { %v1163_v16 = vrot.slane %v247_v14, %v1087_v2  ;;  %v1262_v58 = vrot.slane %v263_v55, %v1090_v5  ;;  %v1265_v59 = vrot.slane %v267_v56, %v1090_v5 }
  0x7e   :  { %143 = vst [vmem:[#allocation2 + $0x8] sm:$0xf] %v140_v6  ;;  %v207_v10 = vmul.f32 %v1133_v8, %v205_v7  ;;  %v250_v8 = vsub.s32 2, %v1084_v1 }
  0x7f   :  { %vm288_vm9 = vcmp.ge.s32.totalorder %v1163_v16, 1  ;;  %vm290_vm10 = vcmp.lt.s32.totalorder %v1163_v16, 17  ;;  %vm300_vm15 = vcmp.ge.s32.totalorder %v1163_v16, 4294967295  ;;  %vm302_vm0 = vcmp.lt.s32.totalorder %v1163_v16, 15 }
  0x80   :  { %v235_v11 = vcombine.low %v207_v10, %v207_v10  ;;  %238 = vst [vmem:[#allocation2 + $0x8] sm:$0xf0] %v207_v10  ;;  %v251_v15 = vrot.slane %v1156_v61, %v250_v8  ;;  %vm1176_vm14 = vmand %vm288_vm9, %vm290_vm10  ;;  %vm294_vm7 = vcmp.ge.s32.totalorder %v1262_v58, 1  ;;  %vm296_vm8 = vcmp.lt.s32.totalorder %v1262_v58, 17 }
  0x81   :  { %vm1198_vm5 = vmand %vm300_vm15, %vm302_vm0  ;;  %vm1649_vm9 = vcmp.lt.s32.totalorder %v1166_v17, 1  ;;  %vm295_vm10 = vcmp.ge.s32.totalorder %v1265_v59, 1  ;;  %vm306_vm15 = vcmp.ge.s32.totalorder %v1262_v58, 4294967295  ;;  %vm308_vm0 = vcmp.lt.s32.totalorder %v1262_v58, 15 }
  0x82   :  { %237 = vst [vmem:[#allocation2 + $0x18] sm:$0xf0] %v235_v11  ;;  %v1169_v20 = vrot.slane %v251_v15, %v1087_v2 }
  0x84   :  { %vm289_vm12 = vcmp.ge.s32.totalorder %v1169_v20, 1  ;;  %vm291_vm13 = vcmp.lt.s32.totalorder %v1169_v20, 17  ;;  %vm301_vm2 = vcmp.ge.s32.totalorder %v1169_v20, 4294967295  ;;  %vm303_vm3 = vcmp.lt.s32.totalorder %v1169_v20, 15 }
  0x85   :  { %vm1186_vm1 = vmand %vm289_vm12, %vm291_vm13  ;;  %vm297_vm12 = vcmp.lt.s32.totalorder %v1265_v59, 17 }
  0x86   :  { %vm1208_vm6 = vmand %vm301_vm2, %vm303_vm3  ;;  %vm307_vm3 = vcmp.ge.s32.totalorder %v1265_v59, 4294967295 }
  0x87   :  { %v1142_v9 = vld [vmem:[#allocation2 + $0x8] sm:$0xff]  ;;  %vm1272_vm13 = vmand %vm294_vm7, %vm296_vm8  ;;  %vm309_vm7 = vcmp.lt.s32.totalorder %v1265_v59, 15 }
  0x88   :  { %330 = vrot.lane.b32.xlu1 %v1142_v9, %s1043_s0  ;;  %vm1280_vm2 = vmand %vm295_vm10, %vm297_vm12  ;;  %vm1648_vm10 = vcmp.lt.s32.totalorder %v1166_v17, 127 }
  0x89   :  { %v1146_v12 = vld [vmem:[#allocation2 + $0x18] sm:$0xff]  ;;  %vm1293_vm8 = vmand %vm306_vm15, %vm308_vm0  ;;  %vm276_vm15 = vcmp.ge.s32.totalorder %v1163_v16, 2  ;;  %vm278_vm0 = vcmp.lt.s32.totalorder %v1163_v16, 18 }
  0x8a   :  { %326 = vrot.lane.b32.xlu0 %v1146_v12, %s1043_s0  ;;  %vm1302_vm12 = vmand %vm307_vm3, %vm309_vm7  ;;  %vm422_vm3 = vcmp.lt.s32.totalorder %v1166_v17, 32  ;;  %vm277_vm7 = vcmp.ge.s32.totalorder %v1169_v20, 2 }
  0x8c   :  { %349 = vrot.lane.b32.xlu1 %v1146_v12, %s1044_s2 }
  0x8e   :  { %351 = vrot.lane.b32.xlu0 %v1116_v52, %s1044_s2 }
  0x90   :  { %353 = vrot.lane.b32.xlu1 %v1142_v9, %s1044_s2 }
  0xae   :  { %v325_v13 = vpop.permute.xlu0 %324  ;;  %v329_v18 = vpop.permute.xlu1 %328 }
  0xaf   :  { %v337_v0 = vsel %vm334_vm11, %v329_v18, %v325_v13  ;;  %v335_v27 = vsel %vm334_vm11, %v325_v13, %v329_v18 }
  0xb0   :  { %v339_v25 = vsel %vm1176_vm14, %v337_v0, %v1114_v51  ;;  %v340_v36 = vsel %vm1186_vm1, %v335_v27, %v1116_v52 }
  0xb1   :  { %v343_v31 = vmin.f32 %v1114_v51, %v339_v25  ;;  %v344_v46 = vmin.f32 %v1116_v52, %v340_v36 }
  0xb2   :  { %v348_v19 = vpop.permute.xlu0 %347 }
  0xfa   :  { %v331_v21 = vpop.permute.xlu1 %330 }
  0xfc   :  { %v327_v2 = vpop.permute.xlu0 %326 }
  0xfd   :  { %v338_v23 = vsel %vm334_vm11, %v331_v21, %v327_v2  ;;  %v336_v32 = vsel %vm334_vm11, %v327_v2, %v331_v21 }
  0xfe   :  { %v350_v26 = vpop.permute.xlu1 %349  ;;  %v341_v29 = vsel %vm1176_vm14, %v338_v23, %v1146_v12  ;;  %v342_v43 = vsel %vm1186_vm1, %v336_v32, %v1142_v9 }
  0xff   :  { %v345_v39 = vmin.f32 %v1146_v12, %v341_v29  ;;  %v346_v49 = vmin.f32 %v1142_v9, %v342_v43 }
 0x100   :  { %v352_v30 = vpop.permute.xlu0 %351 }
 0x101   :  { %v356_v34 = vsel %vm1650_vm4, %v348_v19, %v352_v30  ;;  %v358_v35 = vsel %vm1650_vm4, %v352_v30, %v348_v19 }
 0x102   :  { %v360_v37 = vsel %vm1198_vm5, %v356_v34, %v1114_v51  ;;  %v354_v38 = vpop.permute.xlu1 %353  ;;  %v361_v44 = vsel %vm1208_vm6, %v358_v35, %v1116_v52 }
 0x103   :  { %v1223_v40 = vmin.f32 %v343_v31, %v360_v37  ;;  %v357_v41 = vsel %vm1650_vm4, %v350_v26, %v354_v38  ;;  %v359_v42 = vsel %vm1650_vm4, %v354_v38, %v350_v26  ;;  %v365_v50 = vmin.f32 %v344_v46, %v361_v44 }
 0x104   :  { %v362_v45 = vsel %vm1198_vm5, %v357_v41, %v1146_v12  ;;  %v363_v48 = vsel %vm1208_vm6, %v359_v42, %v1142_v9 }
 0x105   :  { %v1239_v47 = vmin.f32 %v345_v39, %v362_v45  ;;  %368 = vrot.lane.b32.xlu0 %v1223_v40, %s1045_s30  ;;  %v367_v53 = vmin.f32 %v346_v49, %v363_v48 }
 0x107   :  { %370 = vrot.lane.b32.xlu1 %v1239_v47, %s1045_s30 }
 0x109   :  { %372 = vrot.lane.b32.xlu0 %v365_v50, %s1045_s30 }
 0x10b   :  { %374 = vrot.lane.b32.xlu1 %v367_v53, %s1045_s30 }
 0x10d   :  { %389 = vrot.lane.b32.xlu0 %v1223_v40, %s1046_s4 }
 0x10f   :  { %391 = vrot.lane.b32.xlu1 %v1239_v47, %s1046_s4 }
 0x111   :  { %393 = vrot.lane.b32.xlu0 %v365_v50, %s1046_s4 }
 0x113   :  { %395 = vrot.lane.b32.xlu1 %v367_v53, %s1046_s4 }
 0x177   :  { %v369_v57 = vpop.permute.xlu0 %368 }
 0x179   :  { %v371_v60 = vpop.permute.xlu1 %370 }
 0x17b   :  { %v373_v1 = vpop.permute.xlu0 %372 }
 0x17c   :  { %v379_v5 = vsel %vm1649_vm9, %v373_v1, %v369_v57  ;;  %v377_v4 = vsel %vm1649_vm9, %v369_v57, %v373_v1 }
 0x17d   :  { %v375_v62 = vpop.permute.xlu1 %374  ;;  %v381_v10 = vsel %vm1272_vm13, %v379_v5, %v1223_v40  ;;  %v382_v8 = vsel %vm1280_vm2, %v377_v4, %v365_v50 }
 0x17e   :  { %v380_v7 = vsel %vm1649_vm9, %v375_v62, %v371_v60  ;;  %v378_v13 = vsel %vm1649_vm9, %v371_v60, %v375_v62  ;;  %v385_v19 = vmin.f32 %v1223_v40, %v381_v10  ;;  %v386_v2 = vmin.f32 %v365_v50, %v382_v8  ;;  %vm1376_vm9 = vmand %vm276_vm15, %vm278_vm0 }
 0x17f   :  { %v390_v6 = vpop.permute.xlu0 %389  ;;  %v383_v15 = vsel %vm1272_vm13, %v380_v7, %v1239_v47  ;;  %v384_v23 = vsel %vm1280_vm2, %v378_v13, %v367_v53  ;;  %vm312_vm15 = vcmp.ge.s32.totalorder %v1163_v16, 4294967294  ;;  %vm313_vm0 = vcmp.ge.s32.totalorder %v1169_v20, 4294967294 }
 0x180   :  { %v387_v29 = vmin.f32 %v1239_v47, %v383_v15  ;;  %v388_v36 = vmin.f32 %v367_v53, %v384_v23 }
 0x181   :  { %v392_v61 = vpop.permute.xlu1 %391 }
 0x183   :  { %v394_v18 = vpop.permute.xlu0 %393 }
 0x184   :  { %v398_v21 = vsel %vm1648_vm10, %v390_v6, %v394_v18  ;;  %v400_v0 = vsel %vm1648_vm10, %v394_v18, %v390_v6 }
 0x185   :  { %v402_v25 = vsel %vm1293_vm8, %v398_v21, %v1223_v40  ;;  %v403_v26 = vsel %vm1302_vm12, %v400_v0, %v365_v50  ;;  %v396_v27 = vpop.permute.xlu1 %395 }
 0x186   :  { %v406_v30 = vmin.f32 %v385_v19, %v402_v25  ;;  %v399_v31 = vsel %vm1648_vm10, %v392_v61, %v396_v27  ;;  %v401_v32 = vsel %vm1648_vm10, %v396_v27, %v392_v61  ;;  %v407_v37 = vmin.f32 %v386_v2, %v403_v26 }
 0x187   :  { %v404_v34 = vsel %vm1293_vm8, %v399_v31, %v1239_v47  ;;  %v405_v35 = vsel %vm1302_vm12, %v401_v32, %v367_v53  ;;  %vm279_vm10 = vcmp.lt.s32.totalorder %v1169_v20, 18 }
 0x188   :  { %v1332_v38 = vsub.f32 %v1114_v51, %v406_v30  ;;  %v408_v39 = vmin.f32 %v387_v29, %v404_v34  ;;  %v409_v40 = vmin.f32 %v388_v36, %v405_v35  ;;  %v1340_v42 = vsub.f32 %v1116_v52, %v407_v37  ;;  %vm1380_vm4 = vmand %vm277_vm7, %vm279_vm10 }
 0x189   :  { %vm1671_vm10 = vcmp.lt.s32.totalorder %v1166_v17, 112  ;;  %vm315_vm7 = vcmp.lt.s32.totalorder %v1169_v20, 14 }
 0x18a   :  { %v1335_v41 = vsub.f32 %v1146_v12, %v408_v39  ;;  %414 = vrot.lane.b32.xlu0 %v1332_v38, %s1036_s15  ;;  %v1345_v43 = vsub.f32 %v1142_v9, %v409_v40 }
 0x18c   :  { %416 = vrot.lane.b32.xlu1 %v1335_v41, %s1036_s15 }
 0x18e   :  { %418 = vrot.lane.b32.xlu0 %v1340_v42, %s1036_s15 }
 0x190   :  { %420 = vrot.lane.b32.xlu1 %v1345_v43, %s1036_s15 }
 0x192   :  { %435 = vrot.lane.b32.xlu0 %v1332_v38, %s1043_s0 }
 0x194   :  { %437 = vrot.lane.b32.xlu1 %v1335_v41, %s1043_s0 }
 0x196   :  { %439 = vrot.lane.b32.xlu0 %v1340_v42, %s1043_s0 }
 0x198   :  { %441 = vrot.lane.b32.xlu1 %v1345_v43, %s1043_s0 }
 0x19a   :  { %455 = vrot.lane.b32.xlu0 %v1332_v38, %s1044_s2 }
 0x19c   :  { %457 = vrot.lane.b32.xlu1 %v1335_v41, %s1044_s2 }
 0x19e   :  { %459 = vrot.lane.b32.xlu0 %v1340_v42, %s1044_s2 }
 0x1a0   :  { %461 = vrot.lane.b32.xlu1 %v1345_v43, %s1044_s2 }
 0x1a2   :  { %475 = vrot.lane.b32.xlu0 %v1332_v38, %s1047_s5 }
 0x1a4   :  { %477 = vrot.lane.b32.xlu1 %v1335_v41, %s1047_s5 }
 0x1a6   :  { %479 = vrot.lane.b32.xlu0 %v1340_v42, %s1047_s5 }
 0x1a8   :  { %481 = vrot.lane.b32.xlu1 %v1345_v43, %s1047_s5 }
 0x1fc   :  { %v415_v51 = vpop.permute.xlu0 %414 }
 0x1fe   :  { %v417_v52 = vpop.permute.xlu1 %416 }
 0x200   :  { %v419_v9 = vpop.permute.xlu0 %418 }
 0x201   :  { %v425_v53 = vsel %vm422_vm3, %v419_v9, %v415_v51  ;;  %v423_v57 = vsel %vm422_vm3, %v415_v51, %v419_v9 }
 0x202   :  { %v421_v12 = vpop.permute.xlu1 %420  ;;  %v427_v1 = vsel %vm1376_vm9, %v425_v53, %v1332_v38  ;;  %v428_v10 = vsel %vm1380_vm4, %v423_v57, %v1340_v42  ;;  %v1049_v57 = vmov 1.0  }
 0x203   :  { %v426_v54 = vsel %vm422_vm3, %v421_v12, %v417_v52  ;;  %v424_v62 = vsel %vm422_vm3, %v417_v52, %v421_v12  ;;  %v431_v15 = vmax.f32 %v1332_v38, %v427_v1  ;;  %vm1672_vm3 = vmmov %vm1671_vm10  ;;  %v432_v30 = vmax.f32 %v1340_v42, %v428_v10  ;;  %644 = vmatprep.mubr.f32.mxu0 %v1049_v57 }
 0x204   :  { %v436_v44 = vpop.permute.xlu0 %435  ;;  %v429_v6 = vsel %vm1376_vm9, %v426_v54, %v1335_v41  ;;  %vm314_vm9 = vcmp.lt.s32.totalorder %v1163_v16, 14  ;;  %v430_v18 = vsel %vm1380_vm4, %v424_v62, %v1345_v43  ;;  %716 = vmatprep.mubr.f32.mxu1 %v1049_v57 }
 0x205   :  { %v433_v0 = vmax.f32 %v1335_v41, %v429_v6  ;;  %vm1431_vm4 = vmand %vm312_vm15, %vm314_vm9  ;;  %v434_v31 = vmax.f32 %v1345_v43, %v430_v18  ;;  %vm504_vm9 = vcmp.lt.s32.totalorder %v1166_v17, 2 }
 0x206   :  { %v438_v45 = vpop.permute.xlu1 %437  ;;  %vm1446_vm15 = vmand %vm313_vm0, %vm315_vm7  ;;  %vm285_vm0 = vcmp.lt.s32.totalorder %v1265_v59, 18 }
 0x208   :  { %v440_v46 = vpop.permute.xlu0 %439 }
 0x209   :  { %v445_v60 = vsel %vm334_vm11, %v440_v46, %v436_v44  ;;  %v443_v61 = vsel %vm334_vm11, %v436_v44, %v440_v46 }
 0x20a   :  { %v442_v47 = vpop.permute.xlu1 %441  ;;  %v447_v8 = vsel %vm1176_vm14, %v445_v60, %v1332_v38  ;;  %v448_v25 = vsel %vm1186_vm1, %v443_v61, %v1340_v42 }
 0x20b   :  { %v446_v5 = vsel %vm334_vm11, %v442_v47, %v438_v45  ;;  %v451_v22 = vmax.f32 %v431_v15, %v447_v8  ;;  %v444_v26 = vsel %vm334_vm11, %v438_v45, %v442_v47  ;;  %vm1676_vm11 = vmmov %vm1672_vm3  ;;  %v452_v40 = vmax.f32 %v432_v30, %v448_v25 }
 0x20c   :  { %v456_v48 = vpop.permute.xlu0 %455  ;;  %v449_v19 = vsel %vm1176_vm14, %v446_v5, %v1335_v41  ;;  %vm1673_vm14 = vmmov %vm1672_vm3  ;;  %v450_v51 = vsel %vm1186_vm1, %v444_v26, %v1345_v43  ;;  %vm282_vm1 = vcmp.ge.s32.totalorder %v1262_v58, 2 }
 0x20d   :  { %v453_v32 = vmax.f32 %v433_v0, %v449_v19 }
 0x20e   :  { %v458_v49 = vpop.permute.xlu1 %457 }
 0x210   :  { %v460_v55 = vpop.permute.xlu0 %459 }
 0x211   :  { %v463_v7 = vsel %vm1671_vm10, %v456_v48, %v460_v55  ;;  %vm483_vm10 = vcmp.lt.s32.totalorder %v1166_v17, 96  ;;  %v465_v27 = vsel %vm1673_vm14, %v460_v55, %v456_v48  ;;  %vm320_vm14 = vcmp.lt.s32.totalorder %v1262_v58, 14 }
 0x212   :  { %v462_v4 = vpop.permute.xlu1 %461  ;;  %v467_v2 = vsel %vm1198_vm5, %v463_v7, %v1332_v38  ;;  %v468_v52 = vsel %vm1208_vm6, %v465_v27, %v1340_v42 }
 0x213   :  { %v464_v21 = vsel %vm1672_vm3, %v458_v49, %v462_v4  ;;  %v471_v36 = vmax.f32 %v451_v22, %v467_v2  ;;  %v466_v37 = vsel %vm1676_vm11, %v462_v4, %v458_v49  ;;  %v454_v49 = vmax.f32 %v434_v31, %v450_v51 }
 0x214   :  { %v476_v13 = vpop.permute.xlu0 %475  ;;  %v469_v34 = vsel %vm1198_vm5, %v464_v21, %v1335_v41  ;;  %v470_v24 = vsel %vm1208_vm6, %v466_v37, %v1345_v43  ;;  %v472_v50 = vmax.f32 %v452_v40, %v468_v52  ;;  %vm284_vm5 = vcmp.lt.s32.totalorder %v1262_v58, 18 }
 0x215   :  { %v473_v12 = vmax.f32 %v453_v32, %v469_v34  ;;  %v474_v54 = vmax.f32 %v454_v49, %v470_v24  ;;  %vm283_vm6 = vcmp.ge.s32.totalorder %v1265_v59, 2  ;;  %vm1522_vm3 = vmand %vm282_vm1, %vm284_vm5  ;;  %vm1683_vm11 = vcmp.lt.s32.totalorder %v1166_v17, 1 }
 0x216   :  { %v478_v23 = vpop.permute.xlu1 %477  ;;  %vm1526_vm7 = vmand %vm283_vm6, %vm285_vm0  ;;  %vm319_vm1 = vcmp.ge.s32.totalorder %v1265_v59, 4294967294  ;;  %vm321_vm5 = vcmp.lt.s32.totalorder %v1265_v59, 14 }
 0x217   :  { %vm1685_vm6 = vmmov %vm1683_vm11 }
 0x218   :  { %v480_v35 = vpop.permute.xlu0 %479  ;;  %vm1686_vm0 = vmmov %vm1685_vm6 }
 0x219   :  { %v484_v39 = vsel %vm483_vm10, %v476_v13, %v480_v35  ;;  %v486_v28 = vsel %vm483_vm10, %v480_v35, %v476_v13 }
 0x21a   :  { %v488_v20 = vsel %vm1431_vm4, %v484_v39, %v1332_v38  ;;  %v482_v9 = vpop.permute.xlu1 %481  ;;  %v489_v47 = vsel %vm1446_vm15, %v486_v28, %v1340_v42 }
 0x21b   :  { %v1463_v44 = vmax.f32 %v471_v36, %v488_v20  ;;  %v485_v45 = vsel %vm483_vm10, %v478_v23, %v482_v9  ;;  %v487_v46 = vsel %vm483_vm10, %v482_v9, %v478_v23  ;;  %v1485_v55 = vmax.f32 %v472_v50, %v489_v47 }
 0x21c   :  { %v490_v48 = vsel %vm1431_vm4, %v485_v45, %v1335_v41  ;;  %v491_v33 = vsel %vm1446_vm15, %v487_v46, %v1345_v43  ;;  %vm318_vm10 = vcmp.ge.s32.totalorder %v1262_v58, 4294967294  ;;  %vm565_vm4 = vcmp.lt.s32.totalorder %v1166_v17, 126  ;;  %vm1684_vm15 = vmmov %vm1683_vm11 }
 0x21d   :  { %v1478_v53 = vmax.f32 %v473_v12, %v490_v48  ;;  %496 = vrot.lane.b32.xlu0 %v1463_v44, %s1037_s16  ;;  %v1489_v56 = vmax.f32 %v474_v54, %v491_v33 }
 0x21f   :  { %498 = vrot.lane.b32.xlu1 %v1478_v53, %s1037_s16 }
 0x221   :  { %500 = vrot.lane.b32.xlu0 %v1485_v55, %s1037_s16 }
 0x223   :  { %502 = vrot.lane.b32.xlu1 %v1489_v56, %s1037_s16 }
 0x225   :  { %517 = vrot.lane.b32.xlu0 %v1463_v44, %s1045_s30 }
 0x227   :  { %519 = vrot.lane.b32.xlu1 %v1478_v53, %s1045_s30 }
 0x229   :  { %521 = vrot.lane.b32.xlu0 %v1485_v55, %s1045_s30 }
 0x22b   :  { %523 = vrot.lane.b32.xlu1 %v1489_v56, %s1045_s30 }
 0x22d   :  { %537 = vrot.lane.b32.xlu0 %v1463_v44, %s1046_s4 }
 0x22f   :  { %539 = vrot.lane.b32.xlu1 %v1478_v53, %s1046_s4 }
 0x231   :  { %541 = vrot.lane.b32.xlu0 %v1485_v55, %s1046_s4 }
 0x233   :  { %543 = vrot.lane.b32.xlu1 %v1489_v56, %s1046_s4 }
 0x235   :  { %557 = vrot.lane.b32.xlu0 %v1463_v44, %s1048_s6 }
 0x237   :  { %559 = vrot.lane.b32.xlu1 %v1478_v53, %s1048_s6 }
 0x239   :  { %561 = vrot.lane.b32.xlu0 %v1485_v55, %s1048_s6 }
 0x23b   :  { %563 = vrot.lane.b32.xlu1 %v1489_v56, %s1048_s6 }
 0x28f   :  { %v497_v60 = vpop.permute.xlu0 %496 }
 0x291   :  { %v499_v1 = vpop.permute.xlu1 %498 }
 0x293   :  { %v501_v62 = vpop.permute.xlu0 %500 }
 0x294   :  { %v505_v18 = vsel %vm504_vm9, %v497_v60, %v501_v62  ;;  %v507_v19 = vsel %vm504_vm9, %v501_v62, %v497_v60 }
 0x295   :  { %v503_v5 = vpop.permute.xlu1 %502  ;;  %v509_v22 = vsel %vm1522_vm3, %v507_v19, %v1463_v44  ;;  %v510_v26 = vsel %vm1526_vm7, %v505_v18, %v1485_v55 }
 0x296   :  { %v506_v21 = vsel %vm504_vm9, %v499_v1, %v503_v5  ;;  %v508_v0 = vsel %vm504_vm9, %v503_v5, %v499_v1  ;;  %vm1687_vm9 = vcmp.lt.s32.totalorder %v1166_v17, 127  ;;  %v513_v40 = vmax.f32 %v1463_v44, %v509_v22 }
 0x297   :  { %v518_v4 = vpop.permute.xlu0 %517  ;;  %v511_v31 = vsel %vm1522_vm3, %v508_v0, %v1478_v53  ;;  %v512_v32 = vsel %vm1526_vm7, %v506_v21, %v1489_v56  ;;  %vm1689_vm3 = vmmov %vm1687_vm9  ;;  %v514_v51 = vmax.f32 %v1485_v55, %v510_v26 }
 0x298   :  { %vm1690_vm7 = vmmov %vm1689_vm3  ;;  %v515_v9 = vmax.f32 %v1478_v53, %v511_v31  ;;  %v516_v12 = vmax.f32 %v1489_v56, %v512_v32 }
 0x299   :  { %v520_v6 = vpop.permute.xlu1 %519 }
 0x29b   :  { %v522_v7 = vpop.permute.xlu0 %521 }
 0x29c   :  { %v525_v23 = vsel %vm1683_vm11, %v518_v4, %v522_v7  ;;  %v527_v25 = vsel %vm1684_vm15, %v522_v7, %v518_v4  ;;  %vm1688_vm11 = vmmov %vm1687_vm9 }
 0x29d   :  { %v524_v10 = vpop.permute.xlu1 %523  ;;  %v529_v36 = vsel %vm1272_vm13, %v527_v25, %v1463_v44  ;;  %v530_v37 = vsel %vm1280_vm2, %v525_v23, %v1485_v55 }
 0x29e   :  { %v526_v27 = vsel %vm1685_vm6, %v520_v6, %v524_v10  ;;  %v528_v29 = vsel %vm1686_vm0, %v524_v10, %v520_v6  ;;  %v533_v24 = vmax.f32 %v513_v40, %v529_v36  ;;  %v534_v47 = vmax.f32 %v514_v51, %v530_v37 }
 0x29f   :  { %v538_v61 = vpop.permute.xlu0 %537  ;;  %v531_v52 = vsel %vm1272_vm13, %v528_v29, %v1478_v53  ;;  %v532_v20 = vsel %vm1280_vm2, %v526_v27, %v1489_v56  ;;  %vm1589_vm13 = vmand %vm318_vm10, %vm320_vm14 }
 0x2a0   :  { %vm1603_vm2 = vmand %vm319_vm1, %vm321_vm5  ;;  %v535_v50 = vmax.f32 %v515_v9, %v531_v52  ;;  %v536_v33 = vmax.f32 %v516_v12, %v532_v20 }
 0x2a1   :  { %v540_v13 = vpop.permute.xlu1 %539 }
 0x2a3   :  { %v542_v2 = vpop.permute.xlu0 %541 }
 0x2a4   :  { %v545_v34 = vsel %vm1687_vm9, %v538_v61, %v542_v2  ;;  %v547_v35 = vsel %vm1688_vm11, %v542_v2, %v538_v61 }
 0x2a5   :  { %v544_v30 = vpop.permute.xlu1 %543  ;;  %v549_v45 = vsel %vm1293_vm8, %v545_v34, %v1463_v44  ;;  %v550_v46 = vsel %vm1302_vm12, %v547_v35, %v1485_v55 }
 0x2a6   :  { %v546_v39 = vsel %vm1689_vm3, %v540_v13, %v544_v30  ;;  %v548_v28 = vsel %vm1690_vm7, %v544_v30, %v540_v13  ;;  %v553_v60 = vmax.f32 %v533_v24, %v549_v45  ;;  %v554_v14 = vmax.f32 %v534_v47, %v550_v46 }
 0x2a7   :  { %v558_v16 = vpop.permute.xlu0 %557  ;;  %v551_v48 = vsel %vm1293_vm8, %v546_v39, %v1478_v53  ;;  %v552_v49 = vsel %vm1302_vm12, %v548_v28, %v1489_v56  ;;  %vm891_vm8 = vcmask 57344  }
 0x2a8   :  { %v555_v62 = vmax.f32 %v535_v50, %v551_v48  ;;  %v556_v6 = vmax.f32 %v536_v33, %v552_v49 }
 0x2a9   :  { %v560_v3 = vpop.permute.xlu1 %559 }
 0x2ab   :  { %v562_v54 = vpop.permute.xlu0 %561 }
 0x2ac   :  { %v566_v11 = vsel %vm565_vm4, %v558_v16, %v562_v54  ;;  %v568_v1 = vsel %vm565_vm4, %v562_v54, %v558_v16 }
 0x2ad   :  { %v570_v59 = vsel %vm1589_vm13, %v566_v11, %v1463_v44  ;;  %v564_v5 = vpop.permute.xlu1 %563  ;;  %v571_v4 = vsel %vm1603_vm2, %v568_v1, %v1485_v55 }
 0x2ae   :  { %v567_v7 = vsel %vm565_vm4, %v560_v3, %v564_v5  ;;  %v569_v10 = vsel %vm565_vm4, %v564_v5, %v560_v3  ;;  %v575_v61 = vmax.f32 %v554_v14, %v571_v4  ;;  %v574_v8 = vmax.f32 %v553_v60, %v570_v59 }
 0x2af   :  { %v572_v13 = vsel %vm1589_vm13, %v567_v7, %v1478_v53  ;;  %v573_v44 = vsel %vm1603_vm2, %v569_v10, %v1489_v56 }
 0x2b0   :  { %v579_v15 = vmul.f32 %v575_v61, %v1345_v43  ;;  %v578_v55 = vmul.f32 %v574_v8, %v1335_v41  ;;  %v577_v18 = vmax.f32 %v556_v6, %v573_v44  ;;  %v576_v19 = vmax.f32 %v555_v62, %v572_v13 }
 0x2b2   :  { %610 = vmatprep.subr.mxu0 %v579_v15  ;;  %v651_v17 = vmul.f32 %v577_v18, %v1340_v42  ;;  %v650_v21 = vmul.f32 %v576_v19, %v1332_v38 }
 0x2b3   :  { %611 = vmatpush1.xpose.msra.mxu0 %v578_v55 }
 0x2b4   :  { %752 = vmatprep.subr.mxu0 %v1345_v43  ;;  %682 = vmatprep.subr.mxu1 %v651_v17 }
 0x2b5   :  { %683 = vmatpush1.xpose.msra.mxu1 %v650_v21 }
 0x2b6   :  { %645 = vmatmul.mubr.f32.vlgmr.msra.gmra.mxu0 %v1049_v57  ;;  %830 = vmatprep.subr.mxu1 %v1340_v42 }
 0x2b7   :  { %753 = vmatpush1.xpose.msra.mxu0 %v1335_v41  ;;  %786 = vmatprep.mubr.f32.mxu0 %v1049_v57 }
 0x2b8   :  { %717 = vmatmul.mubr.f32.vlgmr.msra.gmra.mxu1 %v1049_v57 }
 0x2b9   :  { %831 = vmatpush1.xpose.msra.mxu1 %v1332_v38  ;;  %864 = vmatprep.mubr.f32.mxu1 %v1049_v57 }
 0x2ba   :  { %787 = vmatmul.mubr.f32.vlgmr.msra.gmra.mxu0 %v1049_v57 }
 0x2bc   :  { %865 = vmatmul.mubr.f32.vlgmr.msra.gmra.mxu1 %v1049_v57 }
 0x376   :  { %v646_v43 = vpop.f32.mrf.mxu0 }
 0x378   :  { %v648_v53 = vpop.f32.mrf.mxu0  ;;  %v718_v56 = vpop.f32.mrf.mxu1 }
 0x37a   :  { %v788_v0 = vpop.f32.mrf.mxu0  ;;  %v720_v2 = vpop.f32.mrf.mxu1 }
 0x37b   :  { %v789_v42 = vadd.f32 1e-07, %v788_v0 }
 0x37c   :  { %v866_v23 = vpop.f32.mrf.mxu1  ;;  %v790_v41 = vpop.f32.mrf.mxu0 }
 0x37d   :  { %943 = vrcp.f32 %v789_v42  ;;  %v867_v25 = vadd.f32 1e-07, %v866_v23 }
 0x37e   :  { %v868_v22 = vpop.f32.mrf.mxu1 }
 0x37f   :  { %945 = vrcp.f32 %v867_v25 }
 0x38a   :  { %v944_v26 = vpop.eup %943 }
 0x38b   :  { %v793_v38 = vmul.f32 %v944_v26, %v789_v42 }
 0x38c   :  { %v946_v27 = vpop.eup %945 }
 0x38d   :  { %v794_v29 = vsub.f32 2.0, %v793_v38  ;;  %v871_v30 = vmul.f32 %v946_v27, %v867_v25 }
 0x38f   :  { %v795_v31 = vmul.f32 %v944_v26, %v794_v29  ;;  %v872_v32 = vsub.f32 2.0, %v871_v30 }
 0x391   :  { %v796_v57 = vmul.f32 %v795_v31, %v789_v42  ;;  %v873_v34 = vmul.f32 %v946_v27, %v872_v32 }
 0x393   :  { %v797_v35 = vsub.f32 2.0, %v796_v57  ;;  %v874_v36 = vmul.f32 %v873_v34, %v867_v25 }
 0x395   :  { %v798_v37 = vmul.f32 %v797_v35, %v795_v31  ;;  %v875_v16 = vsub.f32 2.0, %v874_v36 }
 0x397   :  { %v876_v39 = vmul.f32 %v875_v16, %v873_v34  ;;  %v799_v28 = vmul.f32 %v798_v37, %v646_v43 }
 0x399   :  { %v877_v40 = vmul.f32 %v876_v39, %v718_v56  ;;  %v878_v63 = vmul.f32 2.0, %v799_v28 }
 0x39b   :  { %v880_v51 = vadd.f32 %v877_v40, %v799_v28  ;;  %v879_v24 = vmul.f32 %v878_v63, %v877_v40 }
 0x39d   :  { %v881_v52 = vadd.f32 1e-07, %v880_v51 }
 0x39f   :  { %947 = vrcp.f32 %v881_v52 }
 0x3ac   :  { %v948_v20 = vpop.eup %947 }
 0x3ad   :  { %v883_v9 = vmul.f32 %v948_v20, %v881_v52 }
 0x3af   :  { %v884_v12 = vsub.f32 2.0, %v883_v9 }
 0x3b1   :  { %v885_v45 = vmul.f32 %v948_v20, %v884_v12 }
 0x3b3   :  { %v886_v46 = vmul.f32 %v885_v45, %v881_v52 }
 0x3b5   :  { %v887_v3 = vsub.f32 2.0, %v886_v46 }
 0x3b7   :  { %v888_v47 = vmul.f32 %v887_v3, %v885_v45 }
 0x3b9   :  { %v889_v48 = vmul.f32 %v888_v47, %v879_v24 }
 0x3bb   :  { %v890_v49 = vsub.f32 1.0, %v889_v48 }
 0x3bd   :  { %892 = vst.msk [vmem:[#allocation9] sm:$0x1] %vm891_vm8, %v890_v49 }
 0x3be   :  { %1020 = shalt.err (!%p1017_p5)
}
 0x3bf   :  { %902 = dma.vmem_to_hbm [thread:$0]  %s900_s8, 16, %s1647_s3, [#allocation5]  }
 0x3c0   :  { %1033 = dma.done.wait [#allocation5], 16  }
 0x3c1   :  { %1034 = vsyncadd [#allocation5], 4294967280 }
 0x3c2   :  { %906 = vsyncpa [#allocation4], 1 }
 0x3c3   :  { %907 = vsyncpa [#allocation7], 1 }
 0x3c4   :  { %908 = vsyncpa [#allocation5], 1 }

</bundles_post_ra>
